<compile_context>
chip_gen: v5e
topology: v5e:2x2
jax: 0.10.0
libtpu: 0.0.40
codegen_flags: <defaults>
</compile_context>

<pallas_src>
import functools
import math

import jax
import jax.numpy as jnp
from jax.experimental import pallas as pl
from jax.experimental.pallas import tpu as pltpu


# ----------------------------------------------------------------------------
# Kernels
# ----------------------------------------------------------------------------
def _layernorm_kernel(x_ref, a_ref, b_ref, o_ref, *, eps, features, one_pass):
    """Normalize each row of a (tile, F) slab over the feature axis."""
    x = x_ref[...].astype(jnp.float32)
    # torch.std is unbiased (Bessel, N-1).  features == 1 intentionally yields
    # NaN, matching torch.std over a single element -- do NOT "fix" this.
    bessel = 1.0 / (features - 1) if features > 1 else float("nan")
    if one_pass:
        # v7x fast path (VALU-slot-bound with narrow dtypes): both XLU
        # reductions run directly on x, independent of the mean broadcast.
        # f32 accumulation; clamp tiny cancellation-induced negatives.
        s1 = jnp.sum(x, axis=-1, keepdims=True)
        s2 = jnp.sum(x * x, axis=-1, keepdims=True)
        mean = s1 * (1.0 / features)
        var = jnp.maximum((s2 - s1 * mean) * bessel, 0.0)
        diff = x - mean
    else:
        # Two-pass form: numerically safer, and on v5e/v6e the kernel is
        # HBM-bound anyway so the extra full-width multiply is hidden.
        mean = jnp.mean(x, axis=-1, keepdims=True)
        diff = x - mean
        var = jnp.sum(diff * diff, axis=-1, keepdims=True) * bessel
    std = jnp.sqrt(var)
    # One narrow reciprocal on the EUP instead of a full-width VPU divide.
    inv = pl.reciprocal(std + eps, approx=False)
    y = diff * inv * a_ref[...] + b_ref[...]
    o_ref[...] = y.astype(o_ref.dtype)


def _layernorm_packed_kernel(x_ref, a_ref, b_ref, m_ref, o_ref, *, eps, features):
    """LayerNorm over contiguous length-F segments of a (tile, pack*F) slab.

    Per-segment means (and mean squared deviations) are computed with
    (tile, 128) @ (128, 128) matmuls against a 0 / (1/F) block-averaging
    matrix on the otherwise-idle MXU (precision=HIGHEST keeps them
    f32-accurate), so the streamed blocks stay 128-lane dense even for F < 128.
    """
    hi = jax.lax.Precision.HIGHEST
    x = x_ref[...].astype(jnp.float32)            # (tile, pack*F)
    m = m_ref[...]                                # (pack*F, pack*F)
    mean = jnp.dot(x, m, preferred_element_type=jnp.float32, precision=hi)
    diff = x - mean
    msq = jnp.dot(diff * diff, m, preferred_element_type=jnp.float32,
                  precision=hi)                   # per-segment mean of diff^2
    # Bessel correction to match torch.std; features == 1 intentionally NaN.
    corr = features / (features - 1.0) if features > 1 else float("nan")
    std = jnp.sqrt(msq * corr)
    inv = pl.reciprocal(std + eps, approx=False)
    y = diff * inv * a_ref[...] + b_ref[...]
    o_ref[...] = y.astype(o_ref.dtype)


# ----------------------------------------------------------------------------
# Wrapper
# ----------------------------------------------------------------------------
def _round_up(n, m):
    return ((n + m - 1) // m) * m


def _device_kind():
    try:
        return jax.devices()[0].device_kind.lower()
    except Exception:
        return ""


def _vmem_capacity_bytes(kind):
    try:
        cap = int(pltpu.get_tpu_info().vmem_capacity_bytes)
        if cap > 0:
            return cap
    except Exception:
        pass
    if "v7" in kind:
        return 64 * 1024 * 1024
    if "v5" in kind or "v6" in kind:
        return 128 * 1024 * 1024
    return 64 * 1024 * 1024          # conservative default for unknown parts


def layernorm(x, a_2, b_2, *, eps=1e-6, max_rows_per_block=None):
    """LayerNorm over the last axis of x (matches the PyTorch module).

    x: (..., F);  a_2, b_2: (F,).
    `max_rows_per_block` is a test hook that forces small multi-step grids.
    """
    orig_shape = x.shape
    features = orig_shape[-1]
    rows = math.prod(orig_shape[:-1]) if len(orig_shape) > 1 else 1
    if rows == 0 or features == 0:
        return x

    kind = _device_kind()
    is_v7 = "v7" in kind
    itemsize = jnp.dtype(x.dtype).itemsize

    a32 = a_2.astype(jnp.float32)
    b32 = b_2.astype(jnp.float32)

    # ---- lane packing for small feature dims (TBSRN: F = 32 / 64) -----------
    pack = 1
    if 2 <= features < 128 and 128 % features == 0:
        cand = 128 // features
        if rows % cand == 0 and rows >= cand:
            pack = cand
    n_rows = rows // pack
    cols = features * pack

    x2 = x.reshape(n_rows, cols)                 # contiguous -> free reshape
    a2 = jnp.tile(a32, pack).reshape(1, cols)    # hoisted, VMEM-resident
    b2 = jnp.tile(b32, pack).reshape(1, cols)

    # ---- generation-aware VMEM / tile budgeting ------------------------------
    sublane = max(8, 32 // itemsize)             # 8 f32, 16 bf16, 32 int8
    vmem_cap = _vmem_capacity_bytes(kind)
    vmem_limit_bytes = max(32 * 1024 * 1024,
                           min(int(0.6 * vmem_cap), 96 * 1024 * 1024))
    stream_budget = int(0.6 * vmem_limit_bytes)

    # Per block row: double-buffered in + out at native width, plus ~3 f32
    # temporaries (cast x, diff, y) Mosaic materializes during compute.
    bytes_per_row = cols * (4 * itemsize + 3 * 4)
    tile_cap = max(sublane, stream_budget // max(bytes_per_row, 1))
    tile_cap = max(sublane, (tile_cap // sublane) * sublane)
    row_cap = 2048 if is_v7 else 4096            # 128 MiB parts take bigger blocks
    tile_cap = min(tile_cap, row_cap)

    if is_v7 and n_rows > 2 * sublane:
        # Keep >= 2 grid steps so the "parallel" axis can shard across v7x's
        # two TensorCores.  Single-TC parts (v5e/v6e) skip this shrink.
        per_core = _round_up(pl.cdiv(n_rows, 2), sublane)
        tile_cap = min(tile_cap, max(sublane, per_core))

    if max_rows_per_block is not None:           # test hook
        forced = max(sublane, (max_rows_per_block // sublane) * sublane)
        tile_cap = min(tile_cap, forced)

    tile = max(sublane, min(tile_cap, _round_up(n_rows, sublane)))
    if tile >= n_rows:
        tile = n_rows        # single full-extent block: always layout-legal

    grid = (pl.cdiv(n_rows, tile),)              # ragged last block, no padding

    cost = pl.CostEstimate(
        flops=int(7 * rows * features),
        transcendentals=int(2 * rows),
        bytes_accessed=int(2 * rows * features * itemsize),
    )

    if pack > 1:
        seg_ids = jnp.arange(cols, dtype=jnp.int32) // features
        m_mat = (seg_ids[:, None] == seg_ids[None, :]).astype(jnp.float32)
        m_mat = m_mat * (1.0 / features)         # block-averaging matrix
        kernel = functools.partial(_layernorm_packed_kernel,
                                   eps=eps, features=features)
        in_specs = [
            pl.BlockSpec((tile, cols), lambda i: (i, 0)),
            pl.BlockSpec((1, cols), lambda i: (0, 0)),
            pl.BlockSpec((1, cols), lambda i: (0, 0)),
            pl.BlockSpec((cols, cols), lambda i: (0, 0)),
        ]
        operands = (x2, a2, b2, m_mat)
    else:
        # One-pass variance only where it pays off (v7x is VALU-slot-bound for
        # narrow dtypes); elsewhere keep the numerically safer two-pass form.
        one_pass = is_v7 and itemsize < 4
        kernel = functools.partial(_layernorm_kernel, eps=eps,
                                   features=features, one_pass=one_pass)
        in_specs = [
            pl.BlockSpec((tile, cols), lambda i: (i, 0)),
            pl.BlockSpec((1, cols), lambda i: (0, 0)),
            pl.BlockSpec((1, cols), lambda i: (0, 0)),
        ]
        operands = (x2, a2, b2)

    out2 = pl.pallas_call(
        kernel,
        out_shape=jax.ShapeDtypeStruct((n_rows, cols), x.dtype),
        grid_spec=pltpu.PrefetchScalarGridSpec(
            num_scalar_prefetch=0,
            grid=grid,
            in_specs=in_specs,
            out_specs=pl.BlockSpec((tile, cols), lambda i: (i, 0)),
        ),
        compiler_params=pltpu.CompilerParams(
            dimension_semantics=("parallel",),
            vmem_limit_bytes=vmem_limit_bytes,
        ),
        cost_estimate=cost,
    )(*operands)

    return out2.reshape(orig_shape)


# ----------------------------------------------------------------------------
# Reference + demo
# ----------------------------------------------------------------------------
def _reference_layernorm(x, a_2, b_2, eps=1e-6):
    x32 = x.astype(jnp.float32)
    mean = jnp.mean(x32, axis=-1, keepdims=True)
    std = jnp.sqrt(jnp.var(x32, axis=-1, keepdims=True, ddof=1))   # torch.std
    return (a_2 * (x32 - mean) / (std + eps) + b_2).astype(x.dtype)


if __name__ == "__main__":
    # Shapes consistent with the TBSRN transformer blocks (small hidden dims).
    key = jax.random.PRNGKey(0)
    batch, seq, features = 2, 8, 32
    x = jax.random.normal(key, (batch, seq, features), dtype=jnp.float32)
    a_2 = jnp.ones((features,), dtype=jnp.float32)   # module init: ones / zeros
    b_2 = jnp.zeros((features,), dtype=jnp.float32)

    out = jax.block_until_ready(layernorm(x, a_2, b_2, eps=1e-6))
    ref = _reference_layernorm(x, a_2, b_2, eps=1e-6)
    assert out.shape == x.shape
    assert jnp.allclose(out, ref, atol=1e-5, rtol=1e-5), "mismatch (packed path)"

    # Unpacked path: 15 rows (not a multiple of the pack factor), F = 64,
    # non-trivial scale/shift.
    x_b = jax.random.normal(jax.random.PRNGKey(1), (3, 5, 64), dtype=jnp.float32)
    a_b = jax.random.normal(jax.random.PRNGKey(2), (64,), dtype=jnp.float32)
    b_b = jax.random.normal(jax.random.PRNGKey(3), (64,), dtype=jnp.float32)
    out_b = jax.block_until_ready(layernorm(x_b, a_b, b_b, eps=1e-6))
    assert jnp.allclose(out_b, _reference_layernorm(x_b, a_b, b_b),
                        atol=1e-5, rtol=1e-5), "mismatch (unpacked path)"

    # Multi-step ragged grid (no padding): 40 rows, forced 16-row blocks.
    x_c = jax.random.normal(jax.random.PRNGKey(4), (4, 10, 256), dtype=jnp.float32)
    a_c = jax.random.normal(jax.random.PRNGKey(5), (256,), dtype=jnp.float32)
    b_c = jax.random.normal(jax.random.PRNGKey(6), (256,), dtype=jnp.float32)
    out_c = jax.block_until_ready(layernorm(x_c, a_c, b_c, max_rows_per_block=16))
    assert jnp.allclose(out_c, _reference_layernorm(x_c, a_c, b_c),
                        atol=1e-5, rtol=1e-5), "mismatch (ragged grid)"

    # Packed + ragged grid: 40 rows of F=32 -> 10 packed rows, 8-row blocks.
    x_d = jax.random.normal(jax.random.PRNGKey(7), (5, 8, 32), dtype=jnp.float32)
    a_d = jax.random.normal(jax.random.PRNGKey(8), (32,), dtype=jnp.float32)
    b_d = jax.random.normal(jax.random.PRNGKey(9), (32,), dtype=jnp.float32)
    out_d = jax.block_until_ready(layernorm(x_d, a_d, b_d, max_rows_per_block=8))
    assert jnp.allclose(out_d, _reference_layernorm(x_d, a_d, b_d),
                        atol=1e-5, rtol=1e-5), "mismatch (packed ragged grid)"

    print("KERNEL_OK")
</pallas_src>

<mosaic_0001>
module attributes {stable_mosaic.version = 11 : i64} {
  func.func @_layernorm_packed_kernel(%arg0: i32, %arg1: memref<4x128xf32, #tpu.memory_space<vmem>>, %arg2: memref<1x128xf32, #tpu.memory_space<vmem>>, %arg3: memref<1x128xf32, #tpu.memory_space<vmem>>, %arg4: memref<128x128xf32, #tpu.memory_space<vmem>>, %arg5: memref<4x128xf32, #tpu.memory_space<vmem>>) attributes {dimension_semantics = [#tpu.dimension_semantics<parallel>], iteration_bounds = array<i64: 1>, scalar_prefetch = 0 : i64, scratch_operands = 0 : i64, tpu.core_type = #tpu.core_type<tc>, window_params = [{transform_indices = @transform_0, window_bounds = array<i64: 4, 128>}, {pipeline_mode = #tpu.pipeline_mode<synchronous>, transform_indices = @transform_1, window_bounds = array<i64: 1, 128>}, {pipeline_mode = #tpu.pipeline_mode<synchronous>, transform_indices = @transform_2, window_bounds = array<i64: 1, 128>}, {pipeline_mode = #tpu.pipeline_mode<synchronous>, transform_indices = @transform_3, window_bounds = array<i64: 128, 128>}, {transform_indices = @transform_4, window_bounds = array<i64: 4, 128>}]} {
    %c0 = arith.constant 0 : index
    %c0_0 = arith.constant 0 : index
    %0 = vector.load %arg1[%c0, %c0_0] : memref<4x128xf32, #tpu.memory_space<vmem>>, vector<4x128xf32>
    %c0_1 = arith.constant 0 : index
    %c0_2 = arith.constant 0 : index
    %1 = vector.load %arg4[%c0_1, %c0_2] : memref<128x128xf32, #tpu.memory_space<vmem>>, vector<128x128xf32>
    %cst = arith.constant dense<0.000000e+00> : vector<4x128xf32>
    %2 = tpu.matmul %0, %1, %cst {dimension_numbers = #tpu.dot_dimension_numbers<[1], [0], [0], [1], [0, 0, 1, 1], [], []>, precision = #tpu.contract_precision<fp32>} : vector<4x128xf32>, vector<128x128xf32>, vector<4x128xf32> -> vector<4x128xf32>
    %3 = arith.subf %0, %2 : vector<4x128xf32>
    %4 = arith.mulf %3, %3 : vector<4x128xf32>
    %cst_3 = arith.constant dense<0.000000e+00> : vector<4x128xf32>
    %5 = tpu.matmul %4, %1, %cst_3 {dimension_numbers = #tpu.dot_dimension_numbers<[1], [0], [0], [1], [0, 0, 1, 1], [], []>, precision = #tpu.contract_precision<fp32>} : vector<4x128xf32>, vector<128x128xf32>, vector<4x128xf32> -> vector<4x128xf32>
    %cst_4 = arith.constant 1.03225803 : f32
    %6 = vector.broadcast %cst_4 : f32 to vector<4x128xf32>
    %7 = arith.mulf %5, %6 : vector<4x128xf32>
    %8 = math.sqrt %7 : vector<4x128xf32>
    %cst_5 = arith.constant 9.99999997E-7 : f32
    %9 = vector.broadcast %cst_5 : f32 to vector<4x128xf32>
    %10 = arith.addf %8, %9 : vector<4x128xf32>
    %11 = tpu.reciprocal %10 : vector<4x128xf32> -> vector<4x128xf32>
    %12 = arith.mulf %3, %11 : vector<4x128xf32>
    %c0_6 = arith.constant 0 : index
    %c0_7 = arith.constant 0 : index
    %13 = vector.load %arg2[%c0_6, %c0_7] : memref<1x128xf32, #tpu.memory_space<vmem>>, vector<1x128xf32>
    %14 = vector.broadcast %13 : vector<1x128xf32> to vector<4x128xf32>
    %15 = arith.mulf %12, %14 : vector<4x128xf32>
    %c0_8 = arith.constant 0 : index
    %c0_9 = arith.constant 0 : index
    %16 = vector.load %arg3[%c0_8, %c0_9] : memref<1x128xf32, #tpu.memory_space<vmem>>, vector<1x128xf32>
    %17 = vector.broadcast %16 : vector<1x128xf32> to vector<4x128xf32>
    %18 = arith.addf %15, %17 : vector<4x128xf32>
    %c0_10 = arith.constant 0 : index
    %c0_11 = arith.constant 0 : index
    %19 = vector.load %arg5[%c0_10, %c0_11] : memref<4x128xf32, #tpu.memory_space<vmem>>, vector<4x128xf32>
    tpu.vector_store %arg5[%c0_10, %c0_11], %18 {strides = array<i32>} : memref<4x128xf32, #tpu.memory_space<vmem>>, vector<4x128xf32>,
    return
  }
  func.func @transform_0(%arg0: i32) -> (i32, i32) {
    %c0_i32 = arith.constant 0 : i32
    %c0_i32_0 = arith.constant 0 : i32
    return %arg0, %c0_i32 : i32, i32
  }
  func.func @transform_1(%arg0: i32) -> (i32, i32) {
    %c0_i32 = arith.constant 0 : i32
    %c0_i32_0 = arith.constant 0 : i32
    %c0_i32_1 = arith.constant 0 : i32
    return %c0_i32, %c0_i32_0 : i32, i32
  }
  func.func @transform_2(%arg0: i32) -> (i32, i32) {
    %c0_i32 = arith.constant 0 : i32
    %c0_i32_0 = arith.constant 0 : i32
    %c0_i32_1 = arith.constant 0 : i32
    return %c0_i32, %c0_i32_0 : i32, i32
  }
  func.func @transform_3(%arg0: i32) -> (i32, i32) {
    %c0_i32 = arith.constant 0 : i32
    %c0_i32_0 = arith.constant 0 : i32
    %c0_i32_1 = arith.constant 0 : i32
    return %c0_i32, %c0_i32_0 : i32, i32
  }
  func.func @transform_4(%arg0: i32) -> (i32, i32) {
    %c0_i32 = arith.constant 0 : i32
    %c0_i32_0 = arith.constant 0 : i32
    return %arg0, %c0_i32 : i32, i32
  }
}

</mosaic_0001>

<bundles_post_ra>
// kernel: tpu_custom_call.1
= control target key start
LH: loop header
LB: loop body
LE: loop exit
PB: predicated region body
PF: predicated region fallthrough
CT: control target
= control target key end

     0   :  { %9 = vsyncpa [#allocation3], 0  ;;  %s1375_s0 = inlined_call_operand.hbm [shape: f32[4,128], index: 0, kind: input, shape index: {}]   ;;  %s1376_s1 = inlined_call_operand.hbm [shape: f32[1,128], index: 1, kind: input, shape index: {}]   ;;  %s1377_s2 = inlined_call_operand.vmem [shape: f32[1,128], index: 2, kind: input, shape index: {}]   ;;  %s1378_s3 = inlined_call_operand.hbm [shape: f32[128,128], index: 3, kind: input, shape index: {}]   ;;  %s1379_s4 = inlined_call_operand.hbm [shape: f32[4,128], index: 4, kind: output, shape index: {}]  }
   0x1   :  { %10 = vsyncpa [#allocation6], 0  ;;  %s28_s17 = sshll.u32 %s1376_s1, 4  ;;  %s29_s17 = int_to_ptr.hbm [resolvable:$true] %s28_s17 }
   0x2   :  { %11 = vsyncpa [#allocation4], 0  ;;  %s934_s18 = smov [#allocation5]   ;;  %s17_s22 = sshll.u32 %s1375_s0, 4  ;;  %s18_s22 = int_to_ptr.hbm [resolvable:$true] %s17_s22 }
   0x3   :  { %s30_s19 = sshll.u32 %s934_s18, 4  ;;  %s935_s23 = smov [#allocation2]   ;;  %s31_s19 = int_to_ptr.vmem [resolvable:$true] %s30_s19 }
   0x4   :  { %33 = dma.hbm_to_vmem [thread:$0]  %s29_s17, 16, %s31_s19, [#allocation6]  }
   0x5   :  { %s19_s24 = sshll.u32 %s935_s23, 4  ;;  %s40_s27 = sshll.u32 %s1378_s3, 4  ;;  %s20_s24 = int_to_ptr.vmem [resolvable:$true] %s19_s24  ;;  %s41_s27 = int_to_ptr.hbm [resolvable:$true] %s40_s27 }
   0x6   :  { %22 = dma.hbm_to_vmem [thread:$0]  %s18_s22, 64, %s20_s24, [#allocation3]  }
   0x7   :  { %s936_s1 = smov [#allocation7]   ;;  %s937_s29 = smov 128  }
   0x8   :  { %s42_s28 = sshll.u32 %s936_s1, 4  ;;  %s938_s30 = smov 8   ;;  %s43_s28 = int_to_ptr.vmem [resolvable:$true] %s42_s28 }
   0x9   :  { %48 = dma.hbm_to_vmem [thread:$0]  %s41_s27, 2048, %s43_s28, [#allocation6], %s937_s29, %s937_s29, %s938_s30  }
   0xa   :  { %928 = dma.done.wait [#allocation3], 64  }
   0xb   :  { %929 = vsyncadd [#allocation3], 4294967232 }
   0xc   :  { %930 = dma.done.wait [#allocation6], 2064  }
   0xd   :  { %931 = vsyncadd [#allocation6], 4294965232  ;;  %v77_v0 = vld [vmem:[#allocation7 + $0x78] sm:$0xff]  ;;  %v76_v1 = vld [vmem:[#allocation7 + $0x70] sm:$0xff]  ;;  %s939_s5 = smov [#allocation8]   ;;  %s809_s9 = sshll.u32 %s1379_s4, 4  ;;  %s810_s9 = int_to_ptr.hbm [resolvable:$true] %s809_s9 }
   0xe   :  { %v75_v2 = vld [vmem:[#allocation7 + $0x68] sm:$0xff]  ;;  %v974_v3 = vand.u32 4294901760, %v77_v0  ;;  %v976_v4 = vand.u32 4294901760, %v76_v1  ;;  %v74_v6 = vld [vmem:[#allocation7 + $0x60] sm:$0xff]  ;;  %v73_v7 = vld [vmem:[#allocation7 + $0x58] sm:$0xff]  ;;  %s807_s6 = sshll.u32 %s939_s5, 4  ;;  %s808_s6 = int_to_ptr.vmem [resolvable:$true] %s807_s6 }
   0xf   :  { %v978_v5 = vand.u32 4294901760, %v75_v2  ;;  %v72_v8 = vld [vmem:[#allocation7 + $0x50] sm:$0xff]  ;;  %v980_v9 = vand.u32 4294901760, %v74_v6  ;;  %v982_v10 = vand.u32 4294901760, %v73_v7  ;;  %v71_v12 = vld [vmem:[#allocation7 + $0x48] sm:$0xff]  ;;  %v70_v13 = vld [vmem:[#allocation7 + $0x40] sm:$0xff] }
  0x10   :  { %v984_v11 = vand.u32 4294901760, %v72_v8  ;;  %79 = vmatpush.msra.mxu0 %v974_v3  ;;  %v988_v14 = vsub.f32 %v77_v0, %v974_v3  ;;  %v991_v15 = vsub.f32 %v76_v1, %v976_v4  ;;  %v996_v17 = vand.u32 4294901760, %v71_v12  ;;  %v69_v18 = vld [vmem:[#allocation7 + $0x38] sm:$0xff]  ;;  %275 = vmatpush.msra.mxu3 %v974_v3  ;;  %v68_v26 = vld [vmem:[#allocation7 + $0x30] sm:$0xff]  ;;  %v67_v36 = vld [vmem:[#allocation7 + $0x28] sm:$0xff] }
  0x11   :  { %v994_v16 = vsub.f32 %v75_v2, %v978_v5  ;;  %v1000_v19 = vsub.f32 %v74_v6, %v980_v9  ;;  %v1003_v20 = vsub.f32 %v73_v7, %v982_v10  ;;  %v1018_v25 = vand.u32 4294901760, %v70_v13  ;;  %v66_v42 = vld [vmem:[#allocation7 + $0x20] sm:$0xff]  ;;  %v65_v47 = vld [vmem:[#allocation7 + $0x18] sm:$0xff]  ;;  %v64_v55 = vld [vmem:[#allocation7 + $0x10] sm:$0xff] }
  0x12   :  { %v1006_v21 = vsub.f32 %v72_v8, %v984_v11  ;;  %81 = vmatpush.msra.mxu0 %v976_v4  ;;  %v1010_v22 = vand.u32 4294901760, %v988_v14  ;;  %v1013_v23 = vand.u32 4294901760, %v991_v15  ;;  %222 = vmatpush.msra.mxu2 %v988_v14  ;;  %v1024_v28 = vand.u32 4294901760, %v69_v18  ;;  %v63_v60 = vld [vmem:[#allocation7 + $0x8] sm:$0xff]  ;;  %v62_v1 = vld [vmem:[#allocation7] sm:$0xff] }
  0x13   :  { %v1016_v24 = vand.u32 4294901760, %v994_v16  ;;  %v1022_v27 = vand.u32 4294901760, %v1000_v19  ;;  %v1027_v29 = vsub.f32 %v71_v12, %v996_v17  ;;  %277 = vmatpush.msra.mxu3 %v976_v4  ;;  %v1038_v33 = vand.u32 4294901760, %v1003_v20  ;;  %v1128_v7 = vld [vmem:[#allocation2] sm:$0xf] }
  0x14   :  { %83 = vmatpush.msra.mxu0 %v978_v5  ;;  %v122_v30 = vsub.f32 %v988_v14, %v1010_v22  ;;  %v128_v31 = vsub.f32 %v991_v15, %v1013_v23  ;;  %225 = vmatpush.msra.mxu2 %v991_v15  ;;  %v1042_v34 = vand.u32 4294901760, %v1006_v21  ;;  %v1044_v35 = vand.u32 4294901760, %v68_v26  ;;  %1394 = vst [vmem:[#allocation18_spill] sm:$0xff] %v1128_v7 }
  0x15   :  { %v134_v32 = vsub.f32 %v994_v16, %v1016_v24  ;;  %279 = vmatpush.msra.mxu3 %v978_v5  ;;  %v140_v39 = vsub.f32 %v1000_v19, %v1022_v27  ;;  %v1055_v40 = vsub.f32 %v70_v13, %v1018_v25  ;;  %v1059_v41 = vand.u32 4294901760, %v1027_v29 }
  0x16   :  { %v1047_v37 = vand.u32 4294901760, %v122_v30  ;;  %85 = vmatpush.msra.mxu0 %v980_v9  ;;  %v1050_v38 = vand.u32 4294901760, %v128_v31  ;;  %228 = vmatpush.msra.mxu2 %v994_v16  ;;  %v146_v44 = vsub.f32 %v1003_v20, %v1038_v33  ;;  %v1068_v45 = vand.u32 4294901760, %v67_v36 }
  0x17   :  { %1388 = vst [vmem:[#allocation12_spill] sm:$0xff] %v1055_v40  ;;  %281 = vmatpush.msra.mxu3 %v980_v9  ;;  %v1064_v43 = vand.u32 4294901760, %v134_v32  ;;  %v1071_v46 = vsub.f32 %v69_v18, %v1024_v28  ;;  %v152_v48 = vsub.f32 %v1006_v21, %v1042_v34  ;;  %v1079_v49 = vand.u32 4294901760, %v140_v39 }
  0x18   :  { %124 = vmatpush.msra.mxu1 %v1047_v37  ;;  %87 = vmatpush.msra.mxu0 %v982_v10  ;;  %v1082_v50 = vand.u32 4294901760, %v1055_v40  ;;  %v1084_v51 = vand.u32 4294901760, %v66_v42  ;;  %v1087_v52 = vsub.f32 %v68_v26, %v1044_v35  ;;  %v158_v53 = vsub.f32 %v1027_v29, %v1059_v41 }
  0x19   :  { %1389 = vst [vmem:[#allocation13_spill] sm:$0xff] %v1071_v46  ;;  %231 = vmatpush.msra.mxu2 %v1000_v19  ;;  %283 = vmatpush.msra.mxu3 %v982_v10  ;;  %v1091_v54 = vand.u32 4294901760, %v65_v47  ;;  %v1097_v56 = vand.u32 4294901760, %v146_v44  ;;  %v1100_v57 = vand.u32 4294901760, %v1071_v46  ;;  %v1103_v58 = vsub.f32 %v67_v36, %v1068_v45 }
  0x1a   :  { %130 = vmatpush.msra.mxu1 %v1050_v38  ;;  %89 = vmatpush.msra.mxu0 %v984_v11  ;;  %1390 = vst [vmem:[#allocation14_spill] sm:$0xff] %v1087_v52  ;;  %v1105_v59 = vand.u32 4294901760, %v152_v48  ;;  %v164_v61 = vsub.f32 %v1055_v40, %v1082_v50  ;;  %v1114_v62 = vand.u32 4294901760, %v1087_v52  ;;  %v1116_v63 = vand.u32 4294901760, %v64_v55 }
  0x1b   :  { %234 = vmatpush.msra.mxu2 %v1003_v20  ;;  %285 = vmatpush.msra.mxu3 %v984_v11  ;;  %1391 = vst [vmem:[#allocation15_spill] sm:$0xff] %v1103_v58  ;;  %v1119_v0 = vsub.f32 %v66_v42, %v1084_v51  ;;  %v1121_v2 = vand.u32 4294901760, %v158_v53  ;;  %v1124_v6 = vsub.f32 %v65_v47, %v1091_v54  ;;  %v1135_v12 = vand.u32 4294901760, %v1103_v58 }
  0x1c   :  { %136 = vmatpush.msra.mxu1 %v1064_v43  ;;  %91 = vmatpush.msra.mxu0 %v996_v17  ;;  %v170_v8 = vsub.f32 %v1071_v46, %v1100_v57  ;;  %v1137_v13 = vand.u32 4294901760, %v63_v60  ;;  %v1140_v18 = vand.u32 4294901760, %v1128_v7  ;;  %v1142_v26 = vand.u32 4294901760, %v62_v1 }
  0x1d   :  { %237 = vmatpush.msra.mxu2 %v1006_v21  ;;  %287 = vmatpush.msra.mxu3 %v996_v17  ;;  %1392 = vst [vmem:[#allocation16_spill] sm:$0xff] %v1119_v0  ;;  %v1148_v30 = vand.u32 4294901760, %v164_v61  ;;  %v176_v31 = vsub.f32 %v1087_v52, %v1114_v62  ;;  %v1153_v32 = vand.u32 4294901760, %v1119_v0  ;;  %v1156_v36 = vsub.f32 %v64_v55, %v1116_v63 }
  0x1e   :  { %142 = vmatpush.msra.mxu1 %v1079_v49  ;;  %93 = vmatpush.msra.mxu0 %v1018_v25  ;;  %1393 = vst [vmem:[#allocation17_spill] sm:$0xff] %v1124_v6  ;;  %v1159_v39 = vand.u32 4294901760, %v1124_v6  ;;  %v1165_v42 = vand.u32 4294901760, %v170_v8  ;;  %v182_v44 = vsub.f32 %v1103_v58, %v1135_v12  ;;  %v1170_v47 = vsub.f32 %v63_v60, %v1137_v13 }
  0x1f   :  { %240 = vmatpush.msra.mxu2 %v1027_v29  ;;  %289 = vmatpush.msra.mxu3 %v1018_v25  ;;  %1395 = vst [vmem:[#allocation19_spill] sm:$0xff] %v1156_v36  ;;  %v111_v48 = vsub.f32 %v1128_v7, %v1140_v18  ;;  %v1178_v53 = vand.u32 4294901760, %v176_v31  ;;  %v188_v55 = vsub.f32 %v1119_v0, %v1153_v32  ;;  %v1183_v61 = vand.u32 4294901760, %v1156_v36 }
  0x20   :  { %148 = vmatpush.msra.mxu1 %v1097_v56  ;;  %95 = vmatpush.msra.mxu0 %v1024_v28  ;;  %v1186_v60 = vsub.f32 %v62_v1, %v1142_v26  ;;  %v1192_v8 = vand.u32 4294901760, %v182_v44  ;;  %v194_v31 = vsub.f32 %v1124_v6, %v1159_v39  ;;  %v1197_v7 = vand.u32 4294901760, %v1170_v47 }
  0x21   :  { %243 = vmatpush.msra.mxu2 %v1055_v40  ;;  %291 = vmatpush.msra.mxu3 %v1024_v28  ;;  %v1203_v1 = vand.u32 4294901760, %v188_v55  ;;  %v200_v44 = vsub.f32 %v1156_v36, %v1183_v61 }
  0x22   :  { %154 = vmatpush.msra.mxu1 %v1105_v59  ;;  %97 = vmatpush.msra.mxu0 %v1044_v35  ;;  %v206_v55 = vsub.f32 %v1170_v47, %v1197_v7 }
  0x23   :  { %246 = vmatpush.msra.mxu2 %v1071_v46  ;;  %293 = vmatpush.msra.mxu3 %v1044_v35 }
  0x24   :  { %160 = vmatpush.msra.mxu1 %v1121_v2  ;;  %99 = vmatpush.msra.mxu0 %v1068_v45 }
  0x25   :  { %249 = vmatpush.msra.mxu2 %v1087_v52  ;;  %295 = vmatpush.msra.mxu3 %v1068_v45  ;;  %v112_v52 = vand.u32 4294901760, %v111_v48 }
  0x26   :  { %166 = vmatpush.msra.mxu1 %v1148_v30  ;;  %101 = vmatpush.msra.mxu0 %v1084_v51 }
  0x27   :  { %252 = vmatpush.msra.mxu2 %v1103_v58  ;;  %297 = vmatpush.msra.mxu3 %v1084_v51  ;;  %v1208_v58 = vand.u32 4294901760, %v1186_v60  ;;  %v113_v46 = vsub.f32 %v111_v48, %v112_v52 }
  0x28   :  { %172 = vmatpush.msra.mxu1 %v1165_v42  ;;  %103 = vmatpush.msra.mxu0 %v1091_v54 }
  0x29   :  { %255 = vmatpush.msra.mxu2 %v1119_v0  ;;  %299 = vmatpush.msra.mxu3 %v1091_v54  ;;  %v1214_v0 = vand.u32 4294901760, %v194_v31  ;;  %v212_v40 = vsub.f32 %v1186_v60, %v1208_v58  ;;  %v1229_v31 = vand.u32 4294901760, %v206_v55  ;;  %v827_v55 = vld [vmem:[%s1377_s2] ss:$0 sm:$0xff] }
  0x2a   :  { %178 = vmatpush.msra.mxu1 %v1178_v53  ;;  %105 = vmatpush.msra.mxu0 %v1116_v63 }
  0x2b   :  { %258 = vmatpush.msra.mxu2 %v1124_v6  ;;  %301 = vmatpush.msra.mxu3 %v1116_v63  ;;  %v1222_v6 = vand.u32 4294901760, %v200_v44  ;;  %v1235_v44 = vand.u32 4294901760, %v212_v40 }
  0x2c   :  { %184 = vmatpush.msra.mxu1 %v1192_v8  ;;  %107 = vmatpush.msra.mxu0 %v1137_v13 }
  0x2d   :  { %261 = vmatpush.msra.mxu2 %v1156_v36  ;;  %303 = vmatpush.msra.mxu3 %v1137_v13  ;;  %v114_v36 = vand.u32 4294901760, %v113_v46 }
  0x2e   :  { %190 = vmatpush.msra.mxu1 %v1203_v1  ;;  %109 = vmatpush.msra.mxu0 %v1142_v26 }
  0x2f   :  { %264 = vmatpush.msra.mxu2 %v1170_v47  ;;  %305 = vmatpush.msra.mxu3 %v1142_v26 }
  0x30   :  { %316 = vmatpush.msrb.mxu0 %v1010_v22  ;;  %196 = vmatpush.msra.mxu1 %v1214_v0 }
  0x31   :  { %267 = vmatpush.msra.mxu2 %v1186_v60  ;;  %309 = vmatmul.f32.vlgmr.msra.gmra.mxu3 %v112_v52 }
  0x32   :  { %320 = vmatpush.msrb.mxu0 %v1013_v23  ;;  %202 = vmatpush.msra.mxu1 %v1222_v6 }
  0x33   :  { %270 = vmatmul.f32.vlgmr.msra.gmra.mxu2 %v111_v48  ;;  %115 = vmatmul.f32.vlgmr.msra.gmra.mxu0 %v114_v36 }
  0x34   :  { %324 = vmatpush.msrb.mxu0 %v1016_v24  ;;  %208 = vmatpush.msra.mxu1 %v1229_v31 }
  0x35   :  { %467 = vmatpush.msrb.mxu3 %v1047_v37  ;;  %422 = vmatpush.msrb.mxu2 %v974_v3 }
  0x36   :  { %328 = vmatpush.msrb.mxu0 %v1022_v27  ;;  %214 = vmatpush.msra.mxu1 %v1235_v44 }
  0x37   :  { %216 = vmatmul.f32.vlgmr.msra.gmra.mxu1 %v1140_v18  ;;  %473 = vmatpush.msrb.mxu3 %v1050_v38 }
  0x38   :  { %383 = vmatpush.msrb.mxu1 %v974_v3  ;;  %332 = vmatpush.msrb.mxu0 %v1038_v33 }
  0x39   :  { %479 = vmatpush.msrb.mxu3 %v1064_v43  ;;  %424 = vmatpush.msrb.mxu2 %v976_v4 }
  0x3a   :  { %385 = vmatpush.msrb.mxu1 %v976_v4  ;;  %336 = vmatpush.msrb.mxu0 %v1042_v34 }
  0x3b   :  { %485 = vmatpush.msrb.mxu3 %v1079_v49  ;;  %426 = vmatpush.msrb.mxu2 %v978_v5 }
  0x3c   :  { %387 = vmatpush.msrb.mxu1 %v978_v5  ;;  %340 = vmatpush.msrb.mxu0 %v1059_v41 }
  0x3d   :  { %491 = vmatpush.msrb.mxu3 %v1097_v56  ;;  %428 = vmatpush.msrb.mxu2 %v980_v9 }
  0x3e   :  { %389 = vmatpush.msrb.mxu1 %v980_v9  ;;  %344 = vmatpush.msrb.mxu0 %v1082_v50 }
  0x3f   :  { %497 = vmatpush.msrb.mxu3 %v1105_v59  ;;  %430 = vmatpush.msrb.mxu2 %v982_v10 }
  0x40   :  { %391 = vmatpush.msrb.mxu1 %v982_v10  ;;  %348 = vmatpush.msrb.mxu0 %v1100_v57 }
  0x41   :  { %503 = vmatpush.msrb.mxu3 %v1121_v2  ;;  %432 = vmatpush.msrb.mxu2 %v984_v11 }
  0x42   :  { %393 = vmatpush.msrb.mxu1 %v984_v11  ;;  %352 = vmatpush.msrb.mxu0 %v1114_v62 }
  0x43   :  { %509 = vmatpush.msrb.mxu3 %v1148_v30  ;;  %434 = vmatpush.msrb.mxu2 %v996_v17 }
  0x44   :  { %395 = vmatpush.msrb.mxu1 %v996_v17  ;;  %356 = vmatpush.msrb.mxu0 %v1135_v12 }
  0x45   :  { %515 = vmatpush.msrb.mxu3 %v1165_v42  ;;  %436 = vmatpush.msrb.mxu2 %v1018_v25 }
  0x46   :  { %397 = vmatpush.msrb.mxu1 %v1018_v25  ;;  %360 = vmatpush.msrb.mxu0 %v1153_v32 }
  0x47   :  { %521 = vmatpush.msrb.mxu3 %v1178_v53  ;;  %438 = vmatpush.msrb.mxu2 %v1024_v28 }
  0x48   :  { %399 = vmatpush.msrb.mxu1 %v1024_v28  ;;  %364 = vmatpush.msrb.mxu0 %v1159_v39 }
  0x49   :  { %527 = vmatpush.msrb.mxu3 %v1192_v8  ;;  %440 = vmatpush.msrb.mxu2 %v1044_v35 }
  0x4a   :  { %401 = vmatpush.msrb.mxu1 %v1044_v35  ;;  %368 = vmatpush.msrb.mxu0 %v1183_v61 }
  0x4b   :  { %533 = vmatpush.msrb.mxu3 %v1203_v1  ;;  %442 = vmatpush.msrb.mxu2 %v1068_v45 }
  0x4c   :  { %403 = vmatpush.msrb.mxu1 %v1068_v45  ;;  %372 = vmatpush.msrb.mxu0 %v1197_v7 }
  0x4d   :  { %539 = vmatpush.msrb.mxu3 %v1214_v0  ;;  %444 = vmatpush.msrb.mxu2 %v1084_v51 }
  0x4e   :  { %405 = vmatpush.msrb.mxu1 %v1084_v51  ;;  %376 = vmatpush.msrb.mxu0 %v1208_v58 }
  0x4f   :  { %378 = vmatmul.f32.vlgmr.msrb.gmra.mxu0 %v1140_v18  ;;  %545 = vmatpush.msrb.mxu3 %v1222_v6 }
  0x50   :  { %407 = vmatpush.msrb.mxu1 %v1091_v54  ;;  %565 = vmatpush.msra.mxu0 %v988_v14  ;;  %v1402_v14 = vld [vmem:[#allocation19_spill] sm:$0xff] }
  0x51   :  { %551 = vmatpush.msrb.mxu3 %v1229_v31  ;;  %446 = vmatpush.msrb.mxu2 %v1091_v54 }
  0x52   :  { %409 = vmatpush.msrb.mxu1 %v1116_v63  ;;  %568 = vmatpush.msra.mxu0 %v991_v15 }
  0x53   :  { %557 = vmatpush.msrb.mxu3 %v1235_v44  ;;  %448 = vmatpush.msrb.mxu2 %v1116_v63 }
  0x54   :  { %411 = vmatpush.msrb.mxu1 %v1137_v13  ;;  %571 = vmatpush.msra.mxu0 %v994_v16 }
  0x55   :  { %726 = vmatpush.msra.mxu3 %v974_v3  ;;  %450 = vmatpush.msrb.mxu2 %v1137_v13 }
  0x56   :  { %413 = vmatpush.msrb.mxu1 %v1142_v26  ;;  %574 = vmatpush.msra.mxu0 %v1000_v19 }
  0x57   :  { %415 = vmatmul.f32.vlgmr.msrb.gmra.mxu1 %v1140_v18  ;;  %728 = vmatpush.msra.mxu3 %v976_v4 }
  0x58   :  { %618 = vmatpush.msra.mxu1 %v974_v3  ;;  %577 = vmatpush.msra.mxu0 %v1003_v20  ;;  %v1396_v3 = vld [vmem:[#allocation12_spill] sm:$0xff] }
  0x59   :  { %730 = vmatpush.msra.mxu3 %v978_v5  ;;  %452 = vmatpush.msrb.mxu2 %v1142_v26 }
  0x5a   :  { %620 = vmatpush.msra.mxu1 %v976_v4  ;;  %580 = vmatpush.msra.mxu0 %v1006_v21  ;;  %v1397_v4 = vld [vmem:[#allocation13_spill] sm:$0xff] }
  0x5b   :  { %732 = vmatpush.msra.mxu3 %v980_v9  ;;  %659 = vmatpush.msra.mxu2 %v1010_v22 }
  0x5c   :  { %622 = vmatpush.msra.mxu1 %v978_v5  ;;  %583 = vmatpush.msra.mxu0 %v1027_v29  ;;  %v1398_v5 = vld [vmem:[#allocation14_spill] sm:$0xff] }
  0x5d   :  { %734 = vmatpush.msra.mxu3 %v982_v10  ;;  %663 = vmatpush.msra.mxu2 %v1013_v23 }
  0x5e   :  { %624 = vmatpush.msra.mxu1 %v980_v9  ;;  %586 = vmatpush.msra.mxu0 %v1396_v3  ;;  %v1399_v9 = vld [vmem:[#allocation15_spill] sm:$0xff] }
  0x5f   :  { %736 = vmatpush.msra.mxu3 %v984_v11  ;;  %667 = vmatpush.msra.mxu2 %v1016_v24 }
  0x60   :  { %626 = vmatpush.msra.mxu1 %v982_v10  ;;  %589 = vmatpush.msra.mxu0 %v1397_v4  ;;  %v1400_v10 = vld [vmem:[#allocation16_spill] sm:$0xff] }
  0x61   :  { %738 = vmatpush.msra.mxu3 %v996_v17  ;;  %671 = vmatpush.msra.mxu2 %v1022_v27 }
  0x62   :  { %628 = vmatpush.msra.mxu1 %v984_v11  ;;  %592 = vmatpush.msra.mxu0 %v1398_v5  ;;  %v1401_v11 = vld [vmem:[#allocation17_spill] sm:$0xff] }
  0x63   :  { %740 = vmatpush.msra.mxu3 %v1018_v25  ;;  %675 = vmatpush.msra.mxu2 %v1038_v33 }
  0x64   :  { %630 = vmatpush.msra.mxu1 %v996_v17  ;;  %595 = vmatpush.msra.mxu0 %v1399_v9 }
  0x65   :  { %742 = vmatpush.msra.mxu3 %v1024_v28  ;;  %679 = vmatpush.msra.mxu2 %v1042_v34 }
  0x66   :  { %632 = vmatpush.msra.mxu1 %v1018_v25  ;;  %598 = vmatpush.msra.mxu0 %v1400_v10 }
  0x67   :  { %744 = vmatpush.msra.mxu3 %v1044_v35  ;;  %683 = vmatpush.msra.mxu2 %v1059_v41 }
  0x68   :  { %634 = vmatpush.msra.mxu1 %v1024_v28  ;;  %601 = vmatpush.msra.mxu0 %v1401_v11  ;;  %v1403_v28 = vld [vmem:[#allocation18_spill] sm:$0xff] }
  0x69   :  { %746 = vmatpush.msra.mxu3 %v1068_v45  ;;  %687 = vmatpush.msra.mxu2 %v1082_v50 }
  0x6a   :  { %636 = vmatpush.msra.mxu1 %v1044_v35  ;;  %604 = vmatpush.msra.mxu0 %v1402_v14 }
  0x6b   :  { %748 = vmatpush.msra.mxu3 %v1084_v51  ;;  %691 = vmatpush.msra.mxu2 %v1100_v57 }
  0x6c   :  { %638 = vmatpush.msra.mxu1 %v1068_v45  ;;  %607 = vmatpush.msra.mxu0 %v1170_v47 }
  0x6d   :  { %750 = vmatpush.msra.mxu3 %v1091_v54  ;;  %695 = vmatpush.msra.mxu2 %v1114_v62 }
  0x6e   :  { %640 = vmatpush.msra.mxu1 %v1084_v51  ;;  %610 = vmatpush.msra.mxu0 %v1186_v60  ;;  %v826_v60 = vld [vmem:[#allocation5] ss:$0 sm:$0xff] }
  0x6f   :  { %752 = vmatpush.msra.mxu3 %v1116_v63  ;;  %699 = vmatpush.msra.mxu2 %v1135_v12 }
  0x70   :  { %642 = vmatpush.msra.mxu1 %v1091_v54 }
  0x71   :  { %754 = vmatpush.msra.mxu3 %v1137_v13  ;;  %703 = vmatpush.msra.mxu2 %v1153_v32 }
  0x72   :  { %644 = vmatpush.msra.mxu1 %v1116_v63 }
  0x73   :  { %756 = vmatpush.msra.mxu3 %v1142_v26  ;;  %707 = vmatpush.msra.mxu2 %v1159_v39 }
  0x74   :  { %646 = vmatpush.msra.mxu1 %v1137_v13 }
  0x75   :  { %711 = vmatpush.msra.mxu2 %v1183_v61 }
  0x76   :  { %648 = vmatpush.msra.mxu1 %v1142_v26 }
  0x77   :  { %715 = vmatpush.msra.mxu2 %v1197_v7 }
  0x79   :  { %719 = vmatpush.msra.mxu2 %v1208_v58 }
  0xb0   :  { %v116_v16 = vpop.f32.mrf.mxu0 }
  0xb4   :  { %v217_v15 = vpop.f32.mrf.mxu1  ;;  %v310_v21 = vpop.f32.mrf.mxu3 }
  0xb5   :  { %v218_v17 = vadd.f32 %v217_v15, %v116_v16 }
  0xb6   :  { %v271_v19 = vpop.f32.mrf.mxu2 }
  0xb7   :  { %v272_v20 = vadd.f32 %v271_v19, %v218_v17 }
  0xb9   :  { %v311_v22 = vadd.f32 %v310_v21, %v272_v20 }
  0xcc   :  { %v379_v23 = vpop.f32.mrf.mxu0 }
  0xcd   :  { %v380_v24 = vadd.f32 %v379_v23, %v311_v22 }
  0xd4   :  { %v416_v25 = vpop.f32.mrf.mxu1 }
  0xd5   :  { %v417_v27 = vadd.f32 %v416_v25, %v380_v24 }
  0xd7   :  { %v419_v29 = vsub.f32 %v1403_v28, %v417_v27 }
  0xd9   :  { %v420_v33 = vmul.f32 %v419_v29, %v419_v29 }
  0xdb   :  { %v453_v34 = vand.u32 4294901760, %v420_v33 }
  0xdd   :  { %v454_v35 = vsub.f32 %v420_v33, %v453_v34  ;;  %559 = vmatmul.f32.vlgmr.msrb.gmra.mxu3 %v453_v34 }
  0xdf   :  { %613 = vmatmul.f32.vlgmr.msra.gmra.mxu0 %v454_v35  ;;  %v455_v37 = vand.u32 4294901760, %v454_v35 }
  0xe1   :  { %652 = vmatmul.f32.vlgmr.msra.gmra.mxu1 %v455_v37  ;;  %v456_v38 = vsub.f32 %v454_v35, %v455_v37 }
  0xe3   :  { %v457_v40 = vand.u32 4294901760, %v456_v38 }
  0xe5   :  { %458 = vmatmul.f32.vlgmr.msrb.gmra.mxu2 %v457_v40  ;;  %758 = vmatmul.f32.vlgmr.msra.gmra.mxu3 %v453_v34 }
  0xed   :  { %721 = vmatmul.f32.vlgmr.msra.gmra.mxu2 %v453_v34 }
 0x15c   :  { %v614_v46 = vpop.f32.mrf.mxu0 }
 0x15e   :  { %v653_v50 = vpop.f32.mrf.mxu1 }
 0x160   :  { %v560_v41 = vpop.f32.mrf.mxu3 }
 0x168   :  { %v459_v43 = vpop.f32.mrf.mxu2  ;;  %v759_v56 = vpop.f32.mrf.mxu3 }
 0x169   :  { %v561_v45 = vadd.f32 %v560_v41, %v459_v43 }
 0x16b   :  { %v615_v49 = vadd.f32 %v614_v46, %v561_v45 }
 0x16d   :  { %v654_v51 = vadd.f32 %v653_v50, %v615_v49 }
 0x170   :  { %v722_v52 = vpop.f32.mrf.mxu2 }
 0x171   :  { %v723_v54 = vadd.f32 %v722_v52, %v654_v51 }
 0x173   :  { %v760_v57 = vadd.f32 %v759_v56, %v723_v54 }
 0x175   :  { %v762_v58 = vmul.f32 1.032258, %v760_v57 }
 0x177   :  { %828 = vrsqrt.f32 %v762_v58  ;;  %vm770_vm0 = vcmp.eq.f32.partialorder %v762_v58, inf  ;;  %v773_v12 = vand.u32 2147483648, %v762_v58  ;;  %vm772_vm1 = vcmp.eq.f32.partialorder %v762_v58, 0.0 }
 0x17d   :  { %v829_v59 = vpop.eup %828 }
 0x17e   :  { %v764_v62 = vmul.f32 %v829_v59, %v762_v58 }
 0x180   :  { %v765_v63 = vmul.f32 %v829_v59, %v764_v62 }
 0x182   :  { %v766_v0 = vmul.f32 0.5, %v765_v63 }
 0x184   :  { %v767_v2 = vsub.f32 1.5, %v766_v0 }
 0x186   :  { %v768_v6 = vmul.f32 %v829_v59, %v767_v2 }
 0x188   :  { %v769_v7 = vmul.f32 %v768_v6, %v762_v58 }
 0x18a   :  { %v771_v13 = vsel %vm770_vm0, %v762_v58, %v769_v7 }
 0x18b   :  { %v774_v18 = vsel %vm772_vm1, %v773_v12, %v771_v13 }
 0x18c   :  { %v775_v26 = vadd.f32 1e-06, %v774_v18 }
 0x18e   :  { %830 = vrcp.f32 %v775_v26  ;;  %v787_v39 = vand.u32 2147483648, %v775_v26  ;;  %v785_v47 = vand.u32 2147483647, %v775_v26  ;;  %vm781_vm3 = vweird.f32 %v775_v26 }
 0x190   :  { %v788_v53 = vor.u32 1.1754944e-38, %v787_v39  ;;  %vm786_vm5 = vcmp.eq.f32.partialorder %v785_v47, 8.507059e+37 }
 0x194   :  { %v831_v30 = vpop.eup %830 }
 0x195   :  { %v777_v32 = vmul.f32 %v831_v30, %v775_v26  ;;  %vm782_vm2 = vweird.f32 %v831_v30 }
 0x196   :  { %vm783_vm4 = vmor %vm781_vm3, %vm782_vm2 }
 0x197   :  { %v778_v36 = vsub.f32 1.0, %v777_v32 }
 0x199   :  { %v779_v42 = vmul.f32 %v831_v30, %v778_v36 }
 0x19b   :  { %v780_v48 = vadd.f32 %v831_v30, %v779_v42 }
 0x19d   :  { %v784_v61 = vsel %vm783_vm4, %v831_v30, %v780_v48 }
 0x19e   :  { %v789_v8 = vsel %vm786_vm5, %v788_v53, %v784_v61 }
 0x19f   :  { %v790_v1 = vmul.f32 %v789_v8, %v419_v29 }
 0x1a1   :  { %v795_v31 = vmul.f32 %v826_v60, %v790_v1 }
 0x1a3   :  { %v800_v44 = vadd.f32 %v827_v55, %v795_v31 }
 0x1a5   :  { %801 = vst [vmem:[#allocation8] sm:$0xf] %v800_v44 }
 0x1a6   :  { %812 = dma.vmem_to_hbm [thread:$0]  %s808_s6, 64, %s810_s9, [#allocation4]  }
 0x1a7   :  { %932 = dma.done.wait [#allocation4], 64  }
 0x1a8   :  { %933 = vsyncadd [#allocation4], 4294967232 }
 0x1a9   :  { %817 = vsyncpa [#allocation3], 1 }
 0x1aa   :  { %818 = vsyncpa [#allocation6], 1 }
 0x1ab   :  { %819 = vsyncpa [#allocation4], 1 }

</bundles_post_ra>
